<compile_context>
chip_gen: v7x
topology: tpu7x:2x2x1
jax: 0.10.0
libtpu: 0.0.40
codegen_flags: <defaults>
</compile_context>

<pallas_src>
import jax
import jax.numpy as jnp
from jax.experimental import pallas as pl
from jax.experimental.pallas import tpu as pltpu


def _round_up(x, m):
    return ((x + m - 1) // m) * m


def classifier_kernel(x_ref, w1_ref, b1_ref, w2_ref, b2_ref,
                      w3_ref, b3_ref, w4_ref, b4_ref, o_ref):
    # Fused 4 matmuls + 3 ReLUs on one (TB, Dpad) batch tile.
    # TODO(synk): dropout(0.3) omitted — inference semantics (identity).
    x = x_ref[...]                                                # bf16 [TB, Dpad]

    h = jnp.dot(x, w1_ref[...], preferred_element_type=jnp.float32) + b1_ref[...]
    h = jnp.maximum(h, 0.0).astype(jnp.bfloat16)

    h = jnp.dot(h, w2_ref[...], preferred_element_type=jnp.float32) + b2_ref[...]
    h = jnp.maximum(h, 0.0).astype(jnp.bfloat16)

    h = jnp.dot(h, w3_ref[...], preferred_element_type=jnp.float32) + b3_ref[...]
    h = jnp.maximum(h, 0.0).astype(jnp.bfloat16)

    logits = jnp.dot(h, w4_ref[...], preferred_element_type=jnp.float32) + b4_ref[...]
    o_ref[...] = logits.astype(o_ref.dtype)                       # f32 [TB, Cpad]


def classifier_forward(x, params, num_classes, *, block_b=512):
    """x: [B, input_size] f32. params: dict of [in,out] weights and (1,out) biases."""
    B, Din = x.shape

    # Lane-dense padding.
    Dpad = _round_up(Din, 128)           # contraction dim of layer 1
    Cpad = _round_up(num_classes, 128)   # output lane dim
    TB = min(block_b, _round_up(B, 8))   # batch tile (multiple of 8 sublanes)
    Bpad = _round_up(B, TB)

    # bf16 MXU operands; zero padding contributes nothing to the matmuls.
    xb = jnp.zeros((Bpad, Dpad), jnp.bfloat16).at[:B, :Din].set(
        x.astype(jnp.bfloat16))
    w1 = jnp.zeros((Dpad, 512), jnp.bfloat16).at[:Din, :].set(
        params["w1"].astype(jnp.bfloat16))
    w2 = params["w2"].astype(jnp.bfloat16)
    w3 = params["w3"].astype(jnp.bfloat16)
    w4 = jnp.zeros((128, Cpad), jnp.bfloat16).at[:, :num_classes].set(
        params["w4"].astype(jnp.bfloat16))
    # Biases stay f32 (added to the f32 accumulator).
    b1 = params["b1"].astype(jnp.float32)
    b2 = params["b2"].astype(jnp.float32)
    b3 = params["b3"].astype(jnp.float32)
    b4 = jnp.zeros((1, Cpad), jnp.float32).at[:, :num_classes].set(
        params["b4"].astype(jnp.float32))

    grid = (Bpad // TB,)

    def tile_map(i):          # x / out: walk the batch axis
        return (i, 0)

    def resident_map(i):      # weights / biases: same block every step (stay in VMEM)
        return (0, 0)

    in_specs = [
        pl.BlockSpec((TB, Dpad), tile_map),
        pl.BlockSpec(w1.shape, resident_map),
        pl.BlockSpec(b1.shape, resident_map),
        pl.BlockSpec(w2.shape, resident_map),
        pl.BlockSpec(b2.shape, resident_map),
        pl.BlockSpec(w3.shape, resident_map),
        pl.BlockSpec(b3.shape, resident_map),
        pl.BlockSpec(w4.shape, resident_map),
        pl.BlockSpec(b4.shape, resident_map),
    ]
    out_spec = pl.BlockSpec((TB, Cpad), tile_map)

    out_padded = pl.pallas_call(
        classifier_kernel,
        out_shape=jax.ShapeDtypeStruct((Bpad, Cpad), jnp.float32),
        grid=grid,
        in_specs=in_specs,
        out_specs=out_spec,
        compiler_params=pltpu.CompilerParams(
            dimension_semantics=("parallel",)),
    )(xb, w1, b1, w2, b2, w3, b3, w4, b4)

    return out_padded[:B, :num_classes]


def init_params(key, input_size, num_classes):
    """Deterministic init matching nn.Linear shapes; weights stored as [in, out]."""
    dims = [(input_size, 512), (512, 256), (256, 128), (128, num_classes)]
    params = {}
    for i, (din, dout) in enumerate(dims, start=1):
        key, kw, kb = jax.random.split(key, 3)
        bound = 1.0 / jnp.sqrt(din)
        params[f"w{i}"] = jax.random.uniform(kw, (din, dout), jnp.float32,
                                             minval=-bound, maxval=bound)
        params[f"b{i}"] = jax.random.uniform(kb, (1, dout), jnp.float32,
                                             minval=-bound, maxval=bound)
    return params


def reference_forward(x, params):
    """Pure-JAX reference with the same bf16-operand / f32-accum numerics."""
    def layer(h, w, b, relu):
        y = jnp.dot(h.astype(jnp.bfloat16), w.astype(jnp.bfloat16),
                    preferred_element_type=jnp.float32) + b
        return jnp.maximum(y, 0.0) if relu else y

    h = layer(x, params["w1"], params["b1"], True)
    h = layer(h, params["w2"], params["b2"], True)
    h = layer(h, params["w3"], params["b3"], True)
    return layer(h, params["w4"], params["b4"], False)


if __name__ == "__main__":
    key = jax.random.PRNGKey(0)
    batch, input_size, num_classes = 8, 64, 16

    kx, kp = jax.random.split(key)
    x = jax.random.normal(kx, (batch, input_size), jnp.float32)
    params = init_params(kp, input_size, num_classes)

    out = classifier_forward(x, params, num_classes)
    out = jax.block_until_ready(out)

    ref = reference_forward(x, params)
    assert out.shape == (batch, num_classes)
    assert jnp.allclose(out, ref, atol=1e-2, rtol=1e-2), (
        float(jnp.max(jnp.abs(out - ref))))

    print("KERNEL_OK")
</pallas_src>

<mosaic_0001>
module attributes {stable_mosaic.version = 11 : i64} {
  func.func @classifier_kernel(%arg0: i32, %arg1: memref<8x128xbf16, #tpu.memory_space<vmem>>, %arg2: memref<128x512xbf16, #tpu.memory_space<vmem>>, %arg3: memref<1x512xf32, #tpu.memory_space<vmem>>, %arg4: memref<512x256xbf16, #tpu.memory_space<vmem>>, %arg5: memref<1x256xf32, #tpu.memory_space<vmem>>, %arg6: memref<256x128xbf16, #tpu.memory_space<vmem>>, %arg7: memref<1x128xf32, #tpu.memory_space<vmem>>, %arg8: memref<128x128xbf16, #tpu.memory_space<vmem>>, %arg9: memref<1x128xf32, #tpu.memory_space<vmem>>, %arg10: memref<8x128xf32, #tpu.memory_space<vmem>>) attributes {dimension_semantics = [#tpu.dimension_semantics<parallel>], iteration_bounds = array<i64: 1>, scalar_prefetch = 0 : i64, scratch_operands = 0 : i64, tpu.core_type = #tpu.core_type<tc>, window_params = [{transform_indices = @transform_0, window_bounds = array<i64: 8, 128>}, {pipeline_mode = #tpu.pipeline_mode<synchronous>, transform_indices = @transform_1, window_bounds = array<i64: 128, 512>}, {pipeline_mode = #tpu.pipeline_mode<synchronous>, transform_indices = @transform_2, window_bounds = array<i64: 1, 512>}, {pipeline_mode = #tpu.pipeline_mode<synchronous>, transform_indices = @transform_3, window_bounds = array<i64: 512, 256>}, {pipeline_mode = #tpu.pipeline_mode<synchronous>, transform_indices = @transform_4, window_bounds = array<i64: 1, 256>}, {pipeline_mode = #tpu.pipeline_mode<synchronous>, transform_indices = @transform_5, window_bounds = array<i64: 256, 128>}, {pipeline_mode = #tpu.pipeline_mode<synchronous>, transform_indices = @transform_6, window_bounds = array<i64: 1, 128>}, {pipeline_mode = #tpu.pipeline_mode<synchronous>, transform_indices = @transform_7, window_bounds = array<i64: 128, 128>}, {pipeline_mode = #tpu.pipeline_mode<synchronous>, transform_indices = @transform_8, window_bounds = array<i64: 1, 128>}, {transform_indices = @transform_9, window_bounds = array<i64: 8, 128>}]} {
    %c0 = arith.constant 0 : index
    %c0_0 = arith.constant 0 : index
    %0 = vector.load %arg1[%c0, %c0_0] : memref<8x128xbf16, #tpu.memory_space<vmem>>, vector<8x128xbf16>
    %c0_1 = arith.constant 0 : index
    %c0_2 = arith.constant 0 : index
    %1 = vector.load %arg2[%c0_1, %c0_2] : memref<128x512xbf16, #tpu.memory_space<vmem>>, vector<128x512xbf16>
    %cst = arith.constant dense<0.000000e+00> : vector<8x512xf32>
    %2 = tpu.matmul %0, %1, %cst {dimension_numbers = #tpu.dot_dimension_numbers<[1], [0], [0], [1], [0, 0, 1, 1], [], []>} : vector<8x128xbf16>, vector<128x512xbf16>, vector<8x512xf32> -> vector<8x512xf32>
    %c0_3 = arith.constant 0 : index
    %c0_4 = arith.constant 0 : index
    %3 = vector.load %arg3[%c0_3, %c0_4] : memref<1x512xf32, #tpu.memory_space<vmem>>, vector<1x512xf32>
    %4 = vector.broadcast %3 : vector<1x512xf32> to vector<8x512xf32>
    %5 = arith.addf %2, %4 : vector<8x512xf32>
    %cst_5 = arith.constant 0.000000e+00 : f32
    %6 = vector.broadcast %cst_5 : f32 to vector<8x512xf32>
    %7 = arith.maximumf %5, %6 : vector<8x512xf32>
    %8 = arith.truncf %7 : vector<8x512xf32> to vector<8x512xbf16>
    %c0_6 = arith.constant 0 : index
    %c0_7 = arith.constant 0 : index
    %9 = vector.load %arg4[%c0_6, %c0_7] : memref<512x256xbf16, #tpu.memory_space<vmem>>, vector<512x256xbf16>
    %cst_8 = arith.constant dense<0.000000e+00> : vector<8x256xf32>
    %10 = tpu.matmul %8, %9, %cst_8 {dimension_numbers = #tpu.dot_dimension_numbers<[1], [0], [0], [1], [0, 0, 1, 1], [], []>} : vector<8x512xbf16>, vector<512x256xbf16>, vector<8x256xf32> -> vector<8x256xf32>
    %c0_9 = arith.constant 0 : index
    %c0_10 = arith.constant 0 : index
    %11 = vector.load %arg5[%c0_9, %c0_10] : memref<1x256xf32, #tpu.memory_space<vmem>>, vector<1x256xf32>
    %12 = vector.broadcast %11 : vector<1x256xf32> to vector<8x256xf32>
    %13 = arith.addf %10, %12 : vector<8x256xf32>
    %cst_11 = arith.constant 0.000000e+00 : f32
    %14 = vector.broadcast %cst_11 : f32 to vector<8x256xf32>
    %15 = arith.maximumf %13, %14 : vector<8x256xf32>
    %16 = arith.truncf %15 : vector<8x256xf32> to vector<8x256xbf16>
    %c0_12 = arith.constant 0 : index
    %c0_13 = arith.constant 0 : index
    %17 = vector.load %arg6[%c0_12, %c0_13] : memref<256x128xbf16, #tpu.memory_space<vmem>>, vector<256x128xbf16>
    %cst_14 = arith.constant dense<0.000000e+00> : vector<8x128xf32>
    %18 = tpu.matmul %16, %17, %cst_14 {dimension_numbers = #tpu.dot_dimension_numbers<[1], [0], [0], [1], [0, 0, 1, 1], [], []>} : vector<8x256xbf16>, vector<256x128xbf16>, vector<8x128xf32> -> vector<8x128xf32>
    %c0_15 = arith.constant 0 : index
    %c0_16 = arith.constant 0 : index
    %19 = vector.load %arg7[%c0_15, %c0_16] : memref<1x128xf32, #tpu.memory_space<vmem>>, vector<1x128xf32>
    %20 = vector.broadcast %19 : vector<1x128xf32> to vector<8x128xf32>
    %21 = arith.addf %18, %20 : vector<8x128xf32>
    %cst_17 = arith.constant 0.000000e+00 : f32
    %22 = vector.broadcast %cst_17 : f32 to vector<8x128xf32>
    %23 = arith.maximumf %21, %22 : vector<8x128xf32>
    %24 = arith.truncf %23 : vector<8x128xf32> to vector<8x128xbf16>
    %c0_18 = arith.constant 0 : index
    %c0_19 = arith.constant 0 : index
    %25 = vector.load %arg8[%c0_18, %c0_19] : memref<128x128xbf16, #tpu.memory_space<vmem>>, vector<128x128xbf16>
    %cst_20 = arith.constant dense<0.000000e+00> : vector<8x128xf32>
    %26 = tpu.matmul %24, %25, %cst_20 {dimension_numbers = #tpu.dot_dimension_numbers<[1], [0], [0], [1], [0, 0, 1, 1], [], []>} : vector<8x128xbf16>, vector<128x128xbf16>, vector<8x128xf32> -> vector<8x128xf32>
    %c0_21 = arith.constant 0 : index
    %c0_22 = arith.constant 0 : index
    %27 = vector.load %arg9[%c0_21, %c0_22] : memref<1x128xf32, #tpu.memory_space<vmem>>, vector<1x128xf32>
    %28 = vector.broadcast %27 : vector<1x128xf32> to vector<8x128xf32>
    %29 = arith.addf %26, %28 : vector<8x128xf32>
    %c0_23 = arith.constant 0 : index
    %c0_24 = arith.constant 0 : index
    %30 = vector.load %arg10[%c0_23, %c0_24] : memref<8x128xf32, #tpu.memory_space<vmem>>, vector<8x128xf32>
    tpu.vector_store %arg10[%c0_23, %c0_24], %29 {strides = array<i32>} : memref<8x128xf32, #tpu.memory_space<vmem>>, vector<8x128xf32>,
    return
  }
  func.func @transform_0(%arg0: i32) -> (i32, i32) {
    %c0_i32 = arith.constant 0 : i32
    %c0_i32_0 = arith.constant 0 : i32
    return %arg0, %c0_i32 : i32, i32
  }
  func.func @transform_1(%arg0: i32) -> (i32, i32) {
    %c0_i32 = arith.constant 0 : i32
    %c0_i32_0 = arith.constant 0 : i32
    %c0_i32_1 = arith.constant 0 : i32
    return %c0_i32, %c0_i32_0 : i32, i32
  }
  func.func @transform_2(%arg0: i32) -> (i32, i32) {
    %c0_i32 = arith.constant 0 : i32
    %c0_i32_0 = arith.constant 0 : i32
    %c0_i32_1 = arith.constant 0 : i32
    return %c0_i32, %c0_i32_0 : i32, i32
  }
  func.func @transform_3(%arg0: i32) -> (i32, i32) {
    %c0_i32 = arith.constant 0 : i32
    %c0_i32_0 = arith.constant 0 : i32
    %c0_i32_1 = arith.constant 0 : i32
    return %c0_i32, %c0_i32_0 : i32, i32
  }
  func.func @transform_4(%arg0: i32) -> (i32, i32) {
    %c0_i32 = arith.constant 0 : i32
    %c0_i32_0 = arith.constant 0 : i32
    %c0_i32_1 = arith.constant 0 : i32
    return %c0_i32, %c0_i32_0 : i32, i32
  }
  func.func @transform_5(%arg0: i32) -> (i32, i32) {
    %c0_i32 = arith.constant 0 : i32
    %c0_i32_0 = arith.constant 0 : i32
    %c0_i32_1 = arith.constant 0 : i32
    return %c0_i32, %c0_i32_0 : i32, i32
  }
  func.func @transform_6(%arg0: i32) -> (i32, i32) {
    %c0_i32 = arith.constant 0 : i32
    %c0_i32_0 = arith.constant 0 : i32
    %c0_i32_1 = arith.constant 0 : i32
    return %c0_i32, %c0_i32_0 : i32, i32
  }
  func.func @transform_7(%arg0: i32) -> (i32, i32) {
    %c0_i32 = arith.constant 0 : i32
    %c0_i32_0 = arith.constant 0 : i32
    %c0_i32_1 = arith.constant 0 : i32
    return %c0_i32, %c0_i32_0 : i32, i32
  }
  func.func @transform_8(%arg0: i32) -> (i32, i32) {
    %c0_i32 = arith.constant 0 : i32
    %c0_i32_0 = arith.constant 0 : i32
    %c0_i32_1 = arith.constant 0 : i32
    return %c0_i32, %c0_i32_0 : i32, i32
  }
  func.func @transform_9(%arg0: i32) -> (i32, i32) {
    %c0_i32 = arith.constant 0 : i32
    %c0_i32_0 = arith.constant 0 : i32
    return %arg0, %c0_i32 : i32, i32
  }
}

</mosaic_0001>

<bundles_post_ra>
// kernel: tpu_custom_call.1
= control target key start
LH: loop header
LB: loop body
LE: loop exit
PB: predicated region body
PF: predicated region fallthrough
CT: control target
= control target key end

     0   :  { %14 = vsyncpa [#allocation3], 0  ;;  %s1881_s0 = inlined_call_operand.hbm [shape: bf16[8,128], index: 0, kind: input, shape index: {}]   ;;  %s1882_s1 = inlined_call_operand.hbm [shape: bf16[128,512], index: 1, kind: input, shape index: {}]   ;;  %s1883_s2 = inlined_call_operand.vmem [shape: f32[1,512], index: 2, kind: input, shape index: {}]   ;;  %s1884_s3 = inlined_call_operand.hbm [shape: bf16[512,256], index: 3, kind: input, shape index: {}]   ;;  %s1885_s4 = inlined_call_operand.vmem [shape: f32[1,256], index: 4, kind: input, shape index: {}]   ;;  %s1886_s5 = inlined_call_operand.hbm [shape: bf16[256,128], index: 5, kind: input, shape index: {}]   ;;  %s1887_s6 = inlined_call_operand.vmem [shape: f32[1,128], index: 6, kind: input, shape index: {}]   ;;  %s1888_s7 = inlined_call_operand.hbm [shape: bf16[128,128], index: 7, kind: input, shape index: {}]   ;;  %s1889_s8 = inlined_call_operand.vmem [shape: f32[1,128], index: 8, kind: input, shape index: {}]   ;;  %s1890_s9 = inlined_call_operand.hbm [shape: f32[8,128], index: 9, kind: output, shape index: {}]  }
   0x1   :  { %15 = vsyncpa [#allocation6], 0 }
   0x2   :  { %16 = vsyncpa [#allocation9], 0 }
   0x3   :  { %17 = vsyncpa [#allocation4], 0  ;;  %s1695_s30 = smov [#allocation5]   ;;  %s1555_s13 = scalar_lea.hbm %s1882_s1, 4096 }
   0x4   :  { %s33_s10 = sshll.u32 %s1695_s30, 4  ;;  %p1556_p0 = scmp.ne.s32.totalorder %s1882_s1, %s1555_s13  ;;  %s34_s10 = int_to_ptr.vmem [resolvable:$true] %s33_s10 }
   0x5   :  { %p1559_p1 = scmp.lt.u32.totalorder %s1555_s13, %s1882_s1 }
   0x7   :  { %p1561_p2 = pnand %p1559_p1, %p1556_p0 }
   0x9   :  { %1564 = shalt.err (!%p1561_p2)
}
   0xa   :  { %s1565_s18 = scalar_lea.vmem %s34_s10, 4096  ;;  %p1570_p4 = scmp.lt.s32.totalorder %s34_s10, %s34_s10 }
   0xb   :  { %p1566_p3 = scmp.ne.s32.totalorder %s34_s10, %s1565_s18  ;;  %p1571_p5 = scmp.lt.s32.totalorder %s1565_s18, %s1565_s18 }
   0xd   :  { %p1572_p6 = por %p1571_p5, %p1570_p4 }
   0xf   :  { %p1573_p7 = pnand %p1572_p6, %p1566_p3 }
  0x11   :  { %1576 = shalt.err (!%p1573_p7)
}
  0x12   :  { %s1696_s19 = smov 256   ;;  %s1697_s20 = smov 16  }
  0x13   :  { %39 = dma.hbm_to_vmem [thread:$0]  %s1882_s1, 4096, %s34_s10, [#allocation6], %s1696_s19, %s1696_s19, %s1697_s20  }
  0x14   :  { %s1698_s23 = smov [#allocation8]   ;;  %s1577_s27 = scalar_lea.hbm %s1886_s5, 2048 }
  0x15   :  { %s61_s24 = sshll.u32 %s1698_s23, 4  ;;  %p1578_p8 = scmp.ne.s32.totalorder %s1886_s5, %s1577_s27  ;;  %s62_s24 = int_to_ptr.vmem [resolvable:$true] %s61_s24 }
  0x16   :  { %p1581_p9 = scmp.lt.u32.totalorder %s1577_s27, %s1886_s5 }
  0x18   :  { %p1583_p10 = pnand %p1581_p9, %p1578_p8 }
  0x1a   :  { %1586 = shalt.err (!%p1583_p10)
}
  0x1b   :  { %s1587_s12 = scalar_lea.vmem %s62_s24, 2048  ;;  %p1592_p12 = scmp.lt.s32.totalorder %s62_s24, %s62_s24 }
  0x1c   :  { %p1588_p11 = scmp.ne.s32.totalorder %s62_s24, %s1587_s12  ;;  %p1593_p13 = scmp.lt.s32.totalorder %s1587_s12, %s1587_s12 }
  0x1e   :  { %p1594_p0 = por %p1593_p13, %p1592_p12 }
  0x20   :  { %p1595_p1 = pnand %p1594_p0, %p1588_p11 }
  0x22   :  { %1598 = shalt.err (!%p1595_p1)
}
  0x23   :  { %s1699_s1 = smov 64   ;;  %s1700_s10 = smov 4  }
  0x24   :  { %67 = dma.hbm_to_vmem [thread:$0]  %s1886_s5, 2048, %s62_s24, [#allocation9], %s1699_s1, %s1699_s1, %s1700_s10  }
  0x25   :  { %s1701_s15 = smov [#allocation2]   ;;  %s1702_s17 = smov [#allocation7]  }
  0x26   :  { %s24_s16 = sshll.u32 %s1701_s15, 4  ;;  %s47_s18 = sshll.u32 %s1702_s17, 4  ;;  %s25_s16 = int_to_ptr.vmem [resolvable:$true] %s24_s16  ;;  %s1787_s18 = int_to_ptr.vmem [resolvable:$true] %s47_s18 }
  0x27   :  { %s1599_s21 = scalar_lea.hbm %s1881_s0, 64 }
  0x28   :  { %p1600_p2 = scmp.ne.s32.totalorder %s1881_s0, %s1599_s21  ;;  %p1603_p3 = scmp.lt.u32.totalorder %s1599_s21, %s1881_s0 }
  0x2a   :  { %p1605_p4 = pnand %p1603_p3, %p1600_p2 }
  0x2c   :  { %1608 = shalt.err (!%p1605_p4)
}
  0x2d   :  { %s1609_s5 = scalar_lea.vmem %s25_s16, 64  ;;  %p1614_p6 = scmp.lt.s32.totalorder %s25_s16, %s25_s16 }
  0x2e   :  { %p1610_p5 = scmp.ne.s32.totalorder %s25_s16, %s1609_s5  ;;  %p1615_p7 = scmp.lt.s32.totalorder %s1609_s5, %s1609_s5 }
  0x30   :  { %p1616_p8 = por %p1615_p7, %p1614_p6 }
  0x32   :  { %p1617_p9 = pnand %p1616_p8, %p1610_p5 }
  0x34   :  { %1620 = shalt.err (!%p1617_p9)
}
  0x35   :  { %27 = dma.hbm_to_vmem [thread:$0]  %s1881_s0, 64, %s25_s16, [#allocation3]  }
  0x36   :  { %s1621_s30 = scalar_lea.hbm %s1884_s3, 8192 }
  0x37   :  { %p1622_p10 = scmp.ne.s32.totalorder %s1884_s3, %s1621_s30  ;;  %p1625_p11 = scmp.lt.u32.totalorder %s1621_s30, %s1884_s3 }
  0x39   :  { %p1627_p12 = pnand %p1625_p11, %p1622_p10 }
  0x3b   :  { %1630 = shalt.err (!%p1627_p12)
}
  0x3c   :  { %s1631_s15 = scalar_lea.vmem %s1787_s18, 8192  ;;  %p1636_p0 = scmp.lt.s32.totalorder %s1787_s18, %s1787_s18 }
  0x3d   :  { %p1632_p13 = scmp.ne.s32.totalorder %s1787_s18, %s1631_s15  ;;  %p1637_p1 = scmp.lt.s32.totalorder %s1631_s15, %s1631_s15 }
  0x3f   :  { %p1638_p2 = por %p1637_p1, %p1636_p0 }
  0x41   :  { %p1639_p3 = pnand %p1638_p2, %p1632_p13 }
  0x43   :  { %1642 = shalt.err (!%p1639_p3)
}
  0x44   :  { %s1703_s0 = smov 128   ;;  %s1704_s16 = smov 8  }
  0x45   :  { %53 = dma.hbm_to_vmem [thread:$0]  %s1884_s3, 8192, %s1787_s18, [#allocation6], %s1703_s0, %s1703_s0, %s1704_s16  }
  0x46   :  { %s1705_s20 = smov [#allocation10]   ;;  %s1643_s25 = scalar_lea.hbm %s1888_s7, 1024 }
  0x47   :  { %s75_s21 = sshll.u32 %s1705_s20, 4  ;;  %p1644_p4 = scmp.ne.s32.totalorder %s1888_s7, %s1643_s25  ;;  %s76_s21 = int_to_ptr.vmem [resolvable:$true] %s75_s21 }
  0x48   :  { %p1647_p5 = scmp.lt.u32.totalorder %s1643_s25, %s1888_s7 }
  0x4a   :  { %p1649_p6 = pnand %p1647_p5, %p1644_p4 }
  0x4c   :  { %1652 = shalt.err (!%p1649_p6)
}
  0x4d   :  { %s1653_s28 = scalar_lea.vmem %s76_s21, 1024  ;;  %p1658_p8 = scmp.lt.s32.totalorder %s76_s21, %s76_s21 }
  0x4e   :  { %p1654_p7 = scmp.ne.s32.totalorder %s76_s21, %s1653_s28  ;;  %p1659_p9 = scmp.lt.s32.totalorder %s1653_s28, %s1653_s28 }
  0x50   :  { %p1660_p10 = por %p1659_p9, %p1658_p8 }
  0x52   :  { %p1661_p11 = pnand %p1660_p10, %p1654_p7 }
  0x54   :  { %1664 = shalt.err (!%p1661_p11)
}
  0x55   :  { %81 = dma.hbm_to_vmem [thread:$0]  %s1888_s7, 1024, %s76_s21, [#allocation9], %s1699_s1, %s1699_s1, %s1700_s10  }
  0x56   :  { %1687 = dma.done.wait [#allocation3], 64  }
  0x57   :  { %1688 = vsyncadd [#allocation3], 4294967232 }
  0x58   :  { %1689 = dma.done.wait [#allocation6], 12288  }
  0x59   :  { %1690 = vsyncadd [#allocation6], 4294955008 }
  0x5a   :  { %1691 = dma.done.wait [#allocation9], 3072  }
  0x5b   :  { %1692 = vsyncadd [#allocation9], 4294964224  ;;  %v1706_v0 = vmov 0   ;;  %v1387_v1 = vld [vmem:[#allocation5 + $0x4] ss:$16 sps:$4 sm:$0xff]   ;;  %vm1708_vm0 = vmmov 0  }
  0x5c   :  { %347 = vmatprep.mubr.bf16.mxu1 %v1706_v0  ;;  %v1389_v2 = vld [vmem:[#allocation5] ss:$16 sps:$4 sm:$0xff]   ;;  %315 = vmatprep.subr.bf16.mxu1 %v1387_v1  ;;  %v1390_v3 = vld [vmem:[#allocation5 + $0x24] ss:$16 sps:$4 sm:$0xff]   ;;  %v1413_v22 = vld [vmem:[#allocation5 + $0xc] ss:$16 sps:$4 sm:$0xff]  }
  0x5d   :  { %316 = vmatpush1.bf16.msra.mxu1 %v1389_v2  ;;  %v1392_v4 = vld [vmem:[#allocation5 + $0x20] ss:$16 sps:$4 sm:$0xff]   ;;  %v1393_v5 = vld [vmem:[#allocation5 + $0x44] ss:$16 sps:$4 sm:$0xff]   ;;  %v1833_v24 = vld [vmem:[#allocation2] sm:$0xf] }
  0x5e   :  { %317 = vmatprep.subr.bf16.mxu1 %v1390_v3  ;;  %v1395_v6 = vld [vmem:[#allocation5 + $0x40] ss:$16 sps:$4 sm:$0xff]   ;;  %v1396_v7 = vld [vmem:[#allocation5 + $0x64] ss:$16 sps:$4 sm:$0xff]   ;;  %v1411_v26 = vld [vmem:[#allocation5 + $0x8] ss:$16 sps:$4 sm:$0xff]  }
  0x5f   :  { %v1398_v8 = vld [vmem:[#allocation5 + $0x60] ss:$16 sps:$4 sm:$0xff]   ;;  %v1399_v9 = vld [vmem:[#allocation5 + $0x84] ss:$16 sps:$4 sm:$0xff]   ;;  %v1416_v27 = vld [vmem:[#allocation5 + $0x2c] ss:$16 sps:$4 sm:$0xff]  }
  0x60   :  { %v1401_v10 = vld [vmem:[#allocation5 + $0x80] ss:$16 sps:$4 sm:$0xff]   ;;  %v1402_v11 = vld [vmem:[#allocation5 + $0xa4] ss:$16 sps:$4 sm:$0xff]   ;;  %v1414_v30 = vld [vmem:[#allocation5 + $0x28] ss:$16 sps:$4 sm:$0xff]  }
  0x61   :  { %318 = vmatpush1.bf16.msra.mxu1 %v1392_v4  ;;  %v1404_v12 = vld [vmem:[#allocation5 + $0xa0] ss:$16 sps:$4 sm:$0xff]   ;;  %v1405_v13 = vld [vmem:[#allocation5 + $0xc4] ss:$16 sps:$4 sm:$0xff]   ;;  %v1419_v31 = vld [vmem:[#allocation5 + $0x4c] ss:$16 sps:$4 sm:$0xff]  }
  0x62   :  { %319 = vmatprep.subr.bf16.mxu1 %v1393_v5  ;;  %v1407_v14 = vld [vmem:[#allocation5 + $0xc0] ss:$16 sps:$4 sm:$0xff]   ;;  %v1435_v15 = vld [vmem:[#allocation7 + $0x4] ss:$8 sps:$4 sm:$0xff]   ;;  %v1438_v17 = vld [vmem:[#allocation7 + $0x14] ss:$8 sps:$4 sm:$0xff]  }
  0x63   :  { %v1437_v16 = vld [vmem:[#allocation7] ss:$8 sps:$4 sm:$0xff]   ;;  %v1408_v18 = vld [vmem:[#allocation5 + $0xe4] ss:$16 sps:$4 sm:$0xff]   ;;  %801 = vmatprep.subr.bf16.mxu0 %v1435_v15  ;;  %v1440_v19 = vld [vmem:[#allocation7 + $0x10] ss:$8 sps:$4 sm:$0xff]   ;;  %v135_v15 = vlaneseq }
  0x64   :  { %802 = vmatpush1.bf16.msra.mxu0 %v1437_v16  ;;  %v1441_v20 = vld [vmem:[#allocation7 + $0x24] ss:$8 sps:$4 sm:$0xff]   ;;  %v1410_v21 = vld [vmem:[#allocation5 + $0xe0] ss:$16 sps:$4 sm:$0xff]   ;;  %v1444_v25 = vld [vmem:[#allocation7 + $0x34] ss:$8 sps:$4 sm:$0xff]  }
  0x65   :  { %320 = vmatpush1.bf16.msra.mxu1 %v1395_v6  ;;  %803 = vmatprep.subr.bf16.mxu0 %v1438_v17  ;;  %v1443_v23 = vld [vmem:[#allocation7 + $0x20] ss:$8 sps:$4 sm:$0xff]   ;;  %v1446_v28 = vld [vmem:[#allocation7 + $0x30] ss:$8 sps:$4 sm:$0xff]   ;;  %v1447_v29 = vld [vmem:[#allocation7 + $0x44] ss:$8 sps:$4 sm:$0xff]  }
  0x66   :  { %321 = vmatprep.subr.bf16.mxu1 %v1396_v7  ;;  %v1449_v32 = vld [vmem:[#allocation7 + $0x40] ss:$8 sps:$4 sm:$0xff]   ;;  %v1450_v34 = vld [vmem:[#allocation7 + $0x54] ss:$8 sps:$4 sm:$0xff]   ;;  %v1452_v36 = vld [vmem:[#allocation7 + $0x50] ss:$8 sps:$4 sm:$0xff]  }
  0x67   :  { %v1417_v33 = vld [vmem:[#allocation5 + $0x48] ss:$16 sps:$4 sm:$0xff]   ;;  %v1422_v35 = vld [vmem:[#allocation5 + $0x6c] ss:$16 sps:$4 sm:$0xff]   ;;  %v1531_v3 = vld [vmem:[#allocation8 + $0x40] sm:$0xff]   ;;  %v1837_v16 = vshrl.u32 %v135_v15, 7 }
  0x68   :  { %804 = vmatpush1.bf16.msra.mxu0 %v1440_v19  ;;  %v1453_v37 = vld [vmem:[#allocation7 + $0x64] ss:$8 sps:$4 sm:$0xff]   ;;  %v1420_v38 = vld [vmem:[#allocation5 + $0x68] ss:$16 sps:$4 sm:$0xff]   ;;  %v1456_v41 = vld [vmem:[#allocation7 + $0x74] ss:$8 sps:$4 sm:$0xff]  }
  0x69   :  { %322 = vmatpush1.bf16.msra.mxu1 %v1398_v8  ;;  %805 = vmatprep.subr.bf16.mxu0 %v1441_v20  ;;  %v1425_v39 = vld [vmem:[#allocation5 + $0x8c] ss:$16 sps:$4 sm:$0xff]   ;;  %v1455_v40 = vld [vmem:[#allocation7 + $0x60] ss:$8 sps:$4 sm:$0xff]   ;;  %v1458_v44 = vld [vmem:[#allocation7 + $0x70] ss:$8 sps:$4 sm:$0xff]  }
  0x6a   :  { %323 = vmatprep.subr.bf16.mxu1 %v1399_v9  ;;  %v1423_v42 = vld [vmem:[#allocation5 + $0x88] ss:$16 sps:$4 sm:$0xff]   ;;  %v1428_v43 = vld [vmem:[#allocation5 + $0xac] ss:$16 sps:$4 sm:$0xff]   ;;  %v1532_v4 = vld [vmem:[#allocation8] sm:$0xff]   ;;  %v137_v17 = vsub.s32 0, %v1837_v16 }
  0x6b   :  { %v1459_v45 = vld [vmem:[#allocation7 + $0x84] ss:$8 sps:$4 sm:$0xff]   ;;  %v1426_v46 = vld [vmem:[#allocation5 + $0xa8] ss:$16 sps:$4 sm:$0xff]   ;;  %v1462_v49 = vld [vmem:[#allocation7 + $0x94] ss:$8 sps:$4 sm:$0xff]  }
  0x6c   :  { %806 = vmatpush1.bf16.msra.mxu0 %v1443_v23  ;;  %v1431_v47 = vld [vmem:[#allocation5 + $0xcc] ss:$16 sps:$4 sm:$0xff]   ;;  %v1461_v48 = vld [vmem:[#allocation7 + $0x80] ss:$8 sps:$4 sm:$0xff]   ;;  %v1464_v52 = vld [vmem:[#allocation7 + $0x90] ss:$8 sps:$4 sm:$0xff]  }
  0x6d   :  { %324 = vmatpush1.bf16.msra.mxu1 %v1401_v10  ;;  %807 = vmatprep.subr.bf16.mxu0 %v1444_v25  ;;  %v1429_v50 = vld [vmem:[#allocation5 + $0xc8] ss:$16 sps:$4 sm:$0xff]   ;;  %v1434_v51 = vld [vmem:[#allocation5 + $0xec] ss:$16 sps:$4 sm:$0xff]   ;;  %v1535_v7 = vld [vmem:[#allocation8 + $0x50] sm:$0xff]   ;;  %v141_v19 = vsub.s32 1, %v1837_v16 }
  0x6e   :  { %325 = vmatprep.subr.bf16.mxu1 %v1402_v11  ;;  %v1465_v53 = vld [vmem:[#allocation7 + $0xa4] ss:$8 sps:$4 sm:$0xff]   ;;  %v1432_v54 = vld [vmem:[#allocation5 + $0xe8] ss:$16 sps:$4 sm:$0xff]   ;;  %v1468_v56 = vld [vmem:[#allocation7 + $0xb4] ss:$8 sps:$4 sm:$0xff]  }
  0x6f   :  { %v1467_v55 = vld [vmem:[#allocation7 + $0xa0] ss:$8 sps:$4 sm:$0xff]   ;;  %v1470_v57 = vld [vmem:[#allocation7 + $0xb0] ss:$8 sps:$4 sm:$0xff]   ;;  %v1471_v58 = vld [vmem:[#allocation7 + $0xc4] ss:$8 sps:$4 sm:$0xff]  }
  0x70   :  { %808 = vmatpush1.bf16.msra.mxu0 %v1446_v28  ;;  %v1473_v59 = vld [vmem:[#allocation7 + $0xc0] ss:$8 sps:$4 sm:$0xff]   ;;  %v1474_v60 = vld [vmem:[#allocation7 + $0xd4] ss:$8 sps:$4 sm:$0xff]   ;;  %v1476_v61 = vld [vmem:[#allocation7 + $0xd0] ss:$8 sps:$4 sm:$0xff]  }
  0x71   :  { %326 = vmatpush1.bf16.msra.mxu1 %v1404_v12  ;;  %809 = vmatprep.subr.bf16.mxu0 %v1447_v29  ;;  %v1477_v62 = vld [vmem:[#allocation7 + $0xe4] ss:$8 sps:$4 sm:$0xff]   ;;  %v1479_v63 = vld [vmem:[#allocation7 + $0xe0] ss:$8 sps:$4 sm:$0xff]   ;;  %v1482_v1 = vld [vmem:[#allocation7 + $0xf0] ss:$8 sps:$4 sm:$0xff]  }
  0x72   :  { %327 = vmatprep.subr.bf16.mxu1 %v1405_v13  ;;  %v1485_v2 = vld [vmem:[#allocation7 + $0x104] ss:$8 sps:$4 sm:$0xff]   ;;  %v1536_v8 = vld [vmem:[#allocation8 + $0x10] sm:$0xff]   ;;  %v1537_v9 = vld [vmem:[#allocation8 + $0x58] sm:$0xff]   ;;  %s1709_s12 = smov [#allocation11]  }
  0x73   :  { %v1533_v5 = vld [vmem:[#allocation8 + $0x48] sm:$0xff]   ;;  %v1538_v10 = vld [vmem:[#allocation8 + $0x18] sm:$0xff]   ;;  %v1539_v11 = vld [vmem:[#allocation8 + $0x60] sm:$0xff]   ;;  %s1182_s13 = sshll.u32 %s1709_s12, 4  ;;  %s1183_s13 = int_to_ptr.vmem [resolvable:$true] %s1182_s13 }
  0x74   :  { %810 = vmatpush1.bf16.msra.mxu0 %v1449_v32  ;;  %v1534_v6 = vld [vmem:[#allocation8 + $0x8] sm:$0xff]   ;;  %v1540_v12 = vld [vmem:[#allocation8 + $0x20] sm:$0xff]   ;;  %v1545_v15 = vld [vmem:[#allocation8 + $0x78] sm:$0xff]   ;;  %p1670_p13 = scmp.lt.s32.totalorder %s1183_s13, %s1183_s13 }
  0x75   :  { %328 = vmatpush1.bf16.msra.mxu1 %v1407_v14  ;;  %811 = vmatprep.subr.bf16.mxu0 %v1450_v34  ;;  %v1541_v13 = vld [vmem:[#allocation8 + $0x68] sm:$0xff]   ;;  %v1486_v34 = vld [vmem:[#allocation7 + $0x110] ss:$8 sps:$4 sm:$0xff]  }
  0x76   :  { %329 = vmatprep.subr.bf16.mxu1 %v1408_v18  ;;  %v1542_v14 = vld [vmem:[#allocation8 + $0x28] sm:$0xff]   ;;  %v1843_v18 = vld [vmem:[%s1883_s2] sm:$0xf] }
  0x77   :  { %v138_v20 = vrot.slane %v1843_v18, %v137_v17 }
  0x78   :  { %812 = vmatpush1.bf16.msra.mxu0 %v1452_v36  ;;  %v1489_v36 = vld [vmem:[#allocation7 + $0x120] ss:$8 sps:$4 sm:$0xff]  }
  0x79   :  { %330 = vmatpush1.bf16.msra.mxu1 %v1410_v21  ;;  %813 = vmatprep.subr.bf16.mxu0 %v1453_v37  ;;  %v142_v21 = vrot.slane %v1843_v18, %v141_v19  ;;  %v1494_v37 = vld [vmem:[#allocation7 + $0x134] ss:$8 sps:$4 sm:$0xff]  }
  0x7a   :  { %356 = vmatprep.subr.bf16.mxu1 %v1413_v22 }
  0x7c   :  { %348 = vmatmul.mubr.bf16.vlgmr.msra.gmra.mrb[0].mxu1 %v1833_v24  ;;  %814 = vmatpush1.bf16.msra.mxu0 %v1455_v40  ;;  %v1495_v40 = vld [vmem:[#allocation7 + $0x140] ss:$8 sps:$4 sm:$0xff]  }
  0x7d   :  { %357 = vmatpush1.bf16.msra.mxu1 %v1411_v26  ;;  %388 = vmatprep.mubr.bf16.mxu1 %v1706_v0  ;;  %v1480_v0 = vld [vmem:[#allocation7 + $0xf4] ss:$8 sps:$4 sm:$0xff]  }
  0x7e   :  { %358 = vmatprep.subr.bf16.mxu1 %v1416_v27  ;;  %815 = vmatprep.subr.bf16.mxu0 %v1456_v41  ;;  %v1500_v41 = vld [vmem:[#allocation7 + $0x154] ss:$8 sps:$4 sm:$0xff]  }
  0x80   :  { %816 = vmatpush1.bf16.msra.mxu0 %v1458_v44  ;;  %v1503_v44 = vld [vmem:[#allocation7 + $0x164] ss:$8 sps:$4 sm:$0xff]  }
  0x81   :  { %359 = vmatpush1.bf16.msra.mxu1 %v1414_v30  ;;  %817 = vmatprep.subr.bf16.mxu0 %v1459_v45  ;;  %v1501_v45 = vld [vmem:[#allocation7 + $0x160] ss:$8 sps:$4 sm:$0xff]  }
  0x82   :  { %360 = vmatprep.subr.bf16.mxu1 %v1419_v31  ;;  %v1483_v31 = vld [vmem:[#allocation7 + $0x100] ss:$8 sps:$4 sm:$0xff]  }
  0x84   :  { %818 = vmatpush1.bf16.msra.mxu0 %v1461_v48 }
  0x85   :  { %361 = vmatpush1.bf16.msra.mxu1 %v1417_v33  ;;  %819 = vmatprep.subr.bf16.mxu0 %v1462_v49  ;;  %v1488_v33 = vld [vmem:[#allocation7 + $0x114] ss:$8 sps:$4 sm:$0xff]  }
  0x86   :  { %362 = vmatprep.subr.bf16.mxu1 %v1422_v35  ;;  %v1491_v35 = vld [vmem:[#allocation7 + $0x124] ss:$8 sps:$4 sm:$0xff]  }
  0x88   :  { %820 = vmatpush1.bf16.msra.mxu0 %v1464_v52 }
  0x89   :  { %363 = vmatpush1.bf16.msra.mxu1 %v1420_v38  ;;  %821 = vmatprep.subr.bf16.mxu0 %v1465_v53  ;;  %v1492_v38 = vld [vmem:[#allocation7 + $0x130] ss:$8 sps:$4 sm:$0xff]   ;;  %v1509_v53 = vld [vmem:[#allocation7 + $0x184] ss:$8 sps:$4 sm:$0xff]  }
  0x8a   :  { %364 = vmatprep.subr.bf16.mxu1 %v1425_v39  ;;  %v1497_v39 = vld [vmem:[#allocation7 + $0x144] ss:$8 sps:$4 sm:$0xff]  }
  0x8c   :  { %822 = vmatpush1.bf16.msra.mxu0 %v1467_v55 }
  0x8d   :  { %365 = vmatpush1.bf16.msra.mxu1 %v1423_v42  ;;  %823 = vmatprep.subr.bf16.mxu0 %v1468_v56  ;;  %v1498_v42 = vld [vmem:[#allocation7 + $0x150] ss:$8 sps:$4 sm:$0xff]   ;;  %v1507_v56 = vld [vmem:[#allocation7 + $0x180] ss:$8 sps:$4 sm:$0xff]  }
  0x8e   :  { %366 = vmatprep.subr.bf16.mxu1 %v1428_v43  ;;  %v149_v43 = vsub.s32 3, %v1837_v16 }
  0x90   :  { %824 = vmatpush1.bf16.msra.mxu0 %v1470_v57 }
  0x91   :  { %367 = vmatpush1.bf16.msra.mxu1 %v1426_v46  ;;  %825 = vmatprep.subr.bf16.mxu0 %v1471_v58  ;;  %v150_v46 = vrot.slane %v1843_v18, %v149_v43  ;;  %v1512_v58 = vld [vmem:[#allocation7 + $0x194] ss:$8 sps:$4 sm:$0xff]  }
  0x92   :  { %368 = vmatprep.subr.bf16.mxu1 %v1431_v47  ;;  %v1506_v47 = vld [vmem:[#allocation7 + $0x174] ss:$8 sps:$4 sm:$0xff]  }
  0x94   :  { %826 = vmatpush1.bf16.msra.mxu0 %v1473_v59  ;;  %v1510_v59 = vld [vmem:[#allocation7 + $0x190] ss:$8 sps:$4 sm:$0xff]  }
  0x95   :  { %369 = vmatpush1.bf16.msra.mxu1 %v1429_v50  ;;  %827 = vmatprep.subr.bf16.mxu0 %v1474_v60  ;;  %v1504_v50 = vld [vmem:[#allocation7 + $0x170] ss:$8 sps:$4 sm:$0xff]   ;;  %v1515_v60 = vld [vmem:[#allocation7 + $0x1a4] ss:$8 sps:$4 sm:$0xff]  }
  0x96   :  { %370 = vmatprep.subr.bf16.mxu1 %v1434_v51 }
  0x98   :  { %828 = vmatpush1.bf16.msra.mxu0 %v1476_v61  ;;  %v1513_v61 = vld [vmem:[#allocation7 + $0x1a0] ss:$8 sps:$4 sm:$0xff]  }
  0x99   :  { %371 = vmatpush1.bf16.msra.mxu1 %v1432_v54  ;;  %829 = vmatprep.subr.bf16.mxu0 %v1477_v62  ;;  %v1518_v62 = vld [vmem:[#allocation7 + $0x1b4] ss:$8 sps:$4 sm:$0xff]  }
  0x9a   :  { %1315 = vmatprep.subr.bf16.mxu1 %v1531_v3  ;;  %v1524_v3 = vld [vmem:[#allocation7 + $0x1d4] ss:$8 sps:$4 sm:$0xff]  }
  0x9c   :  { %389 = vmatmul.mubr.bf16.vlgmr.msra.gmra.mrb[4].mxu1 %v1833_v24  ;;  %830 = vmatpush1.bf16.msra.mxu0 %v1479_v63  ;;  %v1516_v63 = vld [vmem:[#allocation7 + $0x1b0] ss:$8 sps:$4 sm:$0xff]  }
  0x9d   :  { %831 = vmatprep.subr.bf16.mxu0 %v1480_v0  ;;  %1316 = vmatpush3.bf16.msra.mxu1 %v1532_v4  ;;  %v1521_v0 = vld [vmem:[#allocation7 + $0x1c4] ss:$8 sps:$4 sm:$0xff]   ;;  %v1522_v4 = vld [vmem:[#allocation7 + $0x1d0] ss:$8 sps:$4 sm:$0xff]  }
  0x9e   :  { %1317 = vmatprep.subr.bf16.mxu1 %v1533_v5 }
  0xa0   :  { %832 = vmatpush1.bf16.msra.mxu0 %v1482_v1  ;;  %v1519_v1 = vld [vmem:[#allocation7 + $0x1c0] ss:$8 sps:$4 sm:$0xff]  }
  0xa1   :  { %842 = vmatprep.subr.bf16.mxu0 %v1485_v2  ;;  %1318 = vmatpush3.bf16.msra.mxu1 %v1534_v6  ;;  %v145_v2 = vsub.s32 2, %v1837_v16  ;;  %v1527_v6 = vld [vmem:[#allocation7 + $0x1e4] ss:$8 sps:$4 sm:$0xff]   ;;  %v1550_v16 = vld [vmem:[#allocation10 + $0x18] sm:$0xff]  }
  0xa2   :  { %1319 = vmatprep.subr.bf16.mxu1 %v1535_v7  ;;  %v1525_v7 = vld [vmem:[#allocation7 + $0x1e0] ss:$8 sps:$4 sm:$0xff]  }
  0xa3   :  { %v146_v5 = vrot.slane %v1843_v18, %v145_v2  ;;  %v1546_v18 = vld [vmem:[#allocation8 + $0x38] sm:$0xff]  }
  0xa5   :  { %1320 = vmatpush3.bf16.msra.mxu1 %v1536_v8 }
  0xa6   :  { %1321 = vmatprep.subr.bf16.mxu1 %v1537_v9  ;;  %v1530_v9 = vld [vmem:[#allocation7 + $0x1f4] ss:$8 sps:$4 sm:$0xff]  }
  0xa9   :  { %1322 = vmatpush3.bf16.msra.mxu1 %v1538_v10  ;;  %v1528_v10 = vld [vmem:[#allocation7 + $0x1f0] ss:$8 sps:$4 sm:$0xff]  }
  0xaa   :  { %1323 = vmatprep.subr.bf16.mxu1 %v1539_v11 }
  0xad   :  { %1324 = vmatpush3.bf16.msra.mxu1 %v1540_v12 }
  0xae   :  { %1325 = vmatprep.subr.bf16.mxu1 %v1541_v13  ;;  %v1543_v13 = vld [vmem:[#allocation8 + $0x70] sm:$0xff]  }
  0xb1   :  { %1326 = vmatpush3.bf16.msra.mxu1 %v1542_v14  ;;  %v1544_v14 = vld [vmem:[#allocation8 + $0x30] sm:$0xff]  }
  0xb2   :  { %1327 = vmatprep.subr.bf16.mxu1 %v1543_v13 }
  0xb5   :  { %1328 = vmatpush3.bf16.msra.mxu1 %v1544_v14 }
  0xb6   :  { %1329 = vmatprep.subr.bf16.mxu1 %v1545_v15 }
  0xb9   :  { %1330 = vmatpush3.bf16.msra.mxu1 %v1546_v18 }
 0x14f   :  { %v349_v22 = vpop.f32.mrb[0].mxu1 }
 0x150   :  { %v350_v23 = vadd.f32 %v349_v22, %v138_v20  ;;  %v351_v24 = vpop.f32.mrb[1].mxu1  ;;  %v1707_v20 = vmov 0.0  }
 0x151   :  { %v352_v25 = vadd.f32 %v351_v24, %v142_v21  ;;  %v353_v26 = vpop.f32.mrb[2].mxu1  ;;  %1346 = vmatprep.subr.bf16.mxu1 %v1707_v20  ;;  %v469_v21 = vld [vmem:[%s1885_s4] sm:$0x3] }
 0x152   :  { %v397_v27 = vmax.f32 %v350_v23, 0.0  ;;  %v354_v28 = vpop.f32.mrb[3].mxu1  ;;  %v474_v22 = vrot.slane %v469_v21, %v137_v17  ;;  %v478_v23 = vrot.slane %v469_v21, %v141_v19  ;;  %v1549_v17 = vld [vmem:[#allocation10 + $0x10] sm:$0xff]   ;;  %v1551_v19 = vld [vmem:[#allocation10 + $0x20] sm:$0xff]  }
 0x153   :  { %v398_v29 = vmax.f32 %v352_v25, 0.0 }
 0x154   :  { %v401_v32 = vpack.c.bf16 %v397_v27, %v397_v27 }
 0x155   :  { %v402_v30 = vpack.c.bf16 %v398_v29, %v398_v29 }
 0x157   :  { %833 = vmatprep.mubr.bf16.mxu0 %v402_v30 }
 0x158   :  { %834 = vmatmul.mubr.bf16.vlgmr.msra.gmra.mrb[0].mxu0 %v401_v32 }
 0x159   :  { %843 = vmatpush1.bf16.msra.mxu0 %v1483_v31 }
 0x15a   :  { %844 = vmatprep.subr.bf16.mxu0 %v1488_v33  ;;  %v1547_v33 = vld [vmem:[#allocation10] sm:$0xff]  }
 0x15d   :  { %845 = vmatpush1.bf16.msra.mxu0 %v1486_v34 }
 0x15e   :  { %846 = vmatprep.subr.bf16.mxu0 %v1491_v35  ;;  %v1548_v35 = vld [vmem:[#allocation10 + $0x8] sm:$0xff]  }
 0x161   :  { %847 = vmatpush1.bf16.msra.mxu0 %v1489_v36  ;;  %v1552_v36 = vld [vmem:[#allocation10 + $0x28] sm:$0xff]  }
 0x162   :  { %848 = vmatprep.subr.bf16.mxu0 %v1494_v37  ;;  %v1553_v37 = vld [vmem:[#allocation10 + $0x30] sm:$0xff]  }
 0x165   :  { %849 = vmatpush1.bf16.msra.mxu0 %v1492_v38  ;;  %v1554_v38 = vld [vmem:[#allocation10 + $0x38] sm:$0xff]  }
 0x166   :  { %850 = vmatprep.subr.bf16.mxu0 %v1497_v39 }
 0x169   :  { %851 = vmatpush1.bf16.msra.mxu0 %v1495_v40  ;;  %v1289_v40 = vld [vmem:[%s1887_s6] ss:$0 sm:$0xff]  ;;  %s1665_s6 = scalar_lea.vmem %s1183_s13, 128 }
 0x16a   :  { %852 = vmatprep.subr.bf16.mxu0 %v1500_v41  ;;  %p1666_p12 = scmp.ne.s32.totalorder %s1183_s13, %s1665_s6  ;;  %p1671_p0 = scmp.lt.s32.totalorder %s1665_s6, %s1665_s6 }
 0x16c   :  { %p1672_p1 = por %p1671_p0, %p1670_p13 }
 0x16d   :  { %853 = vmatpush1.bf16.msra.mxu0 %v1498_v42 }
 0x16e   :  { %854 = vmatprep.subr.bf16.mxu0 %v1503_v44  ;;  %p1673_p2 = pnand %p1672_p1, %p1666_p12 }
 0x16f   :  { %v390_v48 = vpop.f32.mrb[4].mxu1 }
 0x170   :  { %v392_v49 = vpop.f32.mrb[5].mxu1  ;;  %v391_v8 = vadd.f32 %v390_v48, %v146_v5  ;;  %v1306_v48 = vld [vmem:[%s1889_s8] ss:$0 sm:$0xff] }
 0x171   :  { %855 = vmatpush1.bf16.msra.mxu0 %v1501_v45  ;;  %v393_v51 = vadd.f32 %v392_v49, %v150_v46  ;;  %v394_v52 = vpop.f32.mrb[6].mxu1 }
 0x172   :  { %856 = vmatprep.subr.bf16.mxu0 %v1506_v47  ;;  %v395_v54 = vpop.f32.mrb[7].mxu1  ;;  %v399_v11 = vmax.f32 %v391_v8, 0.0 }
 0x173   :  { %v400_v55 = vmax.f32 %v393_v51, 0.0 }
 0x174   :  { %v403_v12 = vpack.c.bf16 %v399_v11, %v399_v11 }
 0x175   :  { %857 = vmatpush1.bf16.msra.mxu0 %v1504_v50  ;;  %v404_v57 = vpack.c.bf16 %v400_v55, %v400_v55 }
 0x176   :  { %858 = vmatprep.subr.bf16.mxu0 %v1509_v53 }
 0x177   :  { %874 = vmatprep.mubr.bf16.mxu0 %v404_v57 }
 0x179   :  { %859 = vmatpush1.bf16.msra.mxu0 %v1507_v56 }
 0x17a   :  { %860 = vmatprep.subr.bf16.mxu0 %v1512_v58 }
 0x17d   :  { %861 = vmatpush1.bf16.msra.mxu0 %v1510_v59 }
 0x17e   :  { %862 = vmatprep.subr.bf16.mxu0 %v1515_v60 }
 0x181   :  { %863 = vmatpush1.bf16.msra.mxu0 %v1513_v61 }
 0x182   :  { %864 = vmatprep.subr.bf16.mxu0 %v1518_v62 }
 0x185   :  { %865 = vmatpush1.bf16.msra.mxu0 %v1516_v63 }
 0x186   :  { %866 = vmatprep.subr.bf16.mxu0 %v1521_v0 }
 0x189   :  { %867 = vmatpush1.bf16.msra.mxu0 %v1519_v1 }
 0x18a   :  { %868 = vmatprep.subr.bf16.mxu0 %v1524_v3 }
 0x18d   :  { %869 = vmatpush1.bf16.msra.mxu0 %v1522_v4 }
 0x18e   :  { %870 = vmatprep.subr.bf16.mxu0 %v1527_v6 }
 0x191   :  { %871 = vmatpush1.bf16.msra.mxu0 %v1525_v7 }
 0x192   :  { %872 = vmatprep.subr.bf16.mxu0 %v1530_v9 }
 0x195   :  { %873 = vmatpush1.bf16.msra.mxu0 %v1528_v10 }
 0x198   :  { %875 = vmatmul.mubr.bf16.vlgmr.msra.gmra.mrb[0].mxu0 %v403_v12 }
 0x26b   :  { %v876_v24 = vpop.f32.mrb[0].mxu0 }
 0x26c   :  { %v1366_v25 = vadd.f32 %v876_v24, %v474_v22  ;;  %v878_v26 = vpop.f32.mrb[1].mxu0 }
 0x26d   :  { %v1367_v27 = vadd.f32 %v878_v26, %v478_v23  ;;  %v880_v28 = vpop.f32.mrb[2].mxu0 }
 0x26e   :  { %v883_v29 = vmax.f32 %v1366_v25, 0.0  ;;  %v881_v30 = vpop.f32.mrb[3].mxu0 }
 0x26f   :  { %v884_v31 = vmax.f32 %v1367_v27, 0.0 }
 0x270   :  { %v885_v34 = vpack.c.bf16 %v883_v29, %v883_v29 }
 0x271   :  { %v886_v32 = vpack.c.bf16 %v884_v31, %v884_v31 }
 0x273   :  { %1054 = vmatprep.mubr.bf16.mxu1 %v886_v32 }
 0x274   :  { %1055 = vmatmul.mubr.bf16.vlgmr.msra.gmra.mrb[8].mxu1 %v885_v34 }
 0x275   :  { %1347 = vmatpush3.bf16.msra.mxu1 %v1547_v33  ;;  %1362 = vmatprep.mubr.msk.bf16.mxu1 %vm1708_vm0, %v1707_v20 }
 0x276   :  { %1348 = vmatprep.subr.bf16.mxu1 %v1707_v20 }
 0x279   :  { %1349 = vmatpush3.bf16.msra.mxu1 %v1548_v35 }
 0x27a   :  { %1350 = vmatprep.subr.bf16.mxu1 %v1707_v20 }
 0x27d   :  { %1351 = vmatpush3.bf16.msra.mxu1 %v1549_v17 }
 0x27e   :  { %1352 = vmatprep.subr.bf16.mxu1 %v1707_v20 }
 0x281   :  { %1353 = vmatpush3.bf16.msra.mxu1 %v1550_v16 }
 0x282   :  { %1354 = vmatprep.subr.bf16.mxu1 %v1707_v20 }
 0x285   :  { %1355 = vmatpush3.bf16.msra.mxu1 %v1551_v19 }
 0x286   :  { %1356 = vmatprep.subr.bf16.mxu1 %v1707_v20 }
 0x289   :  { %1357 = vmatpush3.bf16.msra.mxu1 %v1552_v36 }
 0x28a   :  { %1358 = vmatprep.subr.bf16.mxu1 %v1707_v20 }
 0x28d   :  { %1359 = vmatpush3.bf16.msra.mxu1 %v1553_v37 }
 0x28e   :  { %1360 = vmatprep.subr.bf16.mxu1 %v1707_v20 }
 0x291   :  { %1361 = vmatpush3.bf16.msra.mxu1 %v1554_v38 }
 0x347   :  { %v1331_v39 = vpop.f32.mrb[8].mxu1 }
 0x348   :  { %v1332_v41 = vpop.f32.mrb[9].mxu1 }
 0x349   :  { %v1333_v42 = vadd.f32 %v1332_v41, %v1331_v39  ;;  %v1334_v43 = vpop.f32.mrb[10].mxu1 }
 0x34a   :  { %v1335_v44 = vpop.f32.mrb[11].mxu1 }
 0x34b   :  { %v1057_v45 = vadd.f32 %v1333_v42, %v1289_v40 }
 0x34d   :  { %v1062_v46 = vmax.f32 %v1057_v45, 0.0 }
 0x34f   :  { %v1063_v47 = vpack.c.bf16 %v1062_v46, %v1062_v46 }
 0x351   :  { %1363 = vmatmul.mubr.bf16.vlgmr.msra.gmra.mrb[12].mxu1 %v1063_v47 }
 0x424   :  { %v1169_v49 = vpop.f32.mrb[12].mxu1 }
 0x425   :  { %v1170_v50 = vadd.f32 %v1306_v48, %v1169_v49  ;;  %v1364_v51 = vpop.f32.mrb[13].mxu1 }
 0x426   :  { %v1172_v52 = vpop.f32.mrb[14].mxu1 }
 0x427   :  { %1175 = vst [vmem:[#allocation11] sm:$0xff] %v1170_v50  ;;  %v1365_v53 = vpop.f32.mrb[15].mxu1 }
 0x428   :  { %1676 = shalt.err (!%p1673_p2)
}
 0x429   :  { %s1677_s8 = scalar_lea.hbm %s1890_s9, 128 }
 0x42a   :  { %p1678_p3 = scmp.ne.s32.totalorder %s1890_s9, %s1677_s8  ;;  %p1681_p4 = scmp.lt.u32.totalorder %s1677_s8, %s1890_s9 }
 0x42c   :  { %p1683_p5 = pnand %p1681_p4, %p1678_p3 }
 0x42e   :  { %1686 = shalt.err (!%p1683_p5)
}
 0x42f   :  { %1185 = dma.vmem_to_hbm [thread:$0]  %s1183_s13, 128, %s1890_s9, [#allocation4]  }
 0x430   :  { %1693 = dma.done.wait [#allocation4], 128  }
 0x431   :  { %1694 = vsyncadd [#allocation4], 4294967168 }
 0x432   :  { %1189 = vsyncpa [#allocation3], 1 }
 0x433   :  { %1190 = vsyncpa [#allocation6], 1 }
 0x434   :  { %1191 = vsyncpa [#allocation9], 1 }
 0x435   :  { %1192 = vsyncpa [#allocation4], 1 }

</bundles_post_ra>
